<compile_context>
chip_gen: v6e
topology: v6e:2x2x1
jax: 0.10.0
libtpu: 0.0.40
codegen_flags: <defaults>
</compile_context>

<pallas_src>
import functools

import jax
import jax.numpy as jnp
from jax.experimental import pallas as pl
from jax.experimental.pallas import tpu as pltpu


def _sublane_multiple(dtype):
    # Minimum second-to-last tile dim per dtype packing.
    return {4: 8, 2: 16, 1: 32}.get(jnp.dtype(dtype).itemsize, 8)


def _choose_lanes(n, sub):
    # Widest lane count (multiple of 128) that divides n exactly -> zero padding
    # for the common conv-activation case; fall back to 128 with minimal padding.
    for lanes in (1024, 512, 256, 128):
        if n % (sub * lanes) == 0:
            return lanes
    return 128


def _vmem_capacity_bytes():
    # Generation-aware physical VMEM (v5e/v6e: 128 MiB, v7x: 64 MiB per TC).
    try:
        return int(pltpu.get_tpu_info().vmem_capacity_bytes)
    except Exception:
        return 64 << 20  # conservative fallback (v7x per-TC figure)


def _softplus_kernel(x_ref, out_ref, *grad_refs, beta, threshold, save_grad):
    # Upcast to f32 for exp/log1p/sigmoid (matters for bf16 inputs near the
    # threshold branch); cast back on store.
    x = x_ref[...].astype(jnp.float32)
    bx = beta * x
    # Safe softplus: clamp the exp argument where the linear branch is taken
    # anyway, then select exactly like torch.F.softplus(beta, threshold).
    sp = jnp.log1p(jnp.exp(jnp.minimum(bx, threshold))) * (1.0 / beta)
    out_ref[...] = jnp.where(bx > threshold, x, sp).astype(out_ref.dtype)

    if save_grad:
        g1_ref, g2_ref = grad_refs
        sig = jax.nn.sigmoid(x)
        g1_ref[...] = sig.astype(g1_ref.dtype)
        g2_ref[...] = (sig * (1.0 - sig)).astype(g2_ref.dtype)


def softplus_pallas(x, beta=1.0, threshold=20.0, *, save_grad=True,
                    grad_dtype=None, block_bytes=None):
    """Returns (output, grad1, grad2) if save_grad else output.

    output has x's shape/dtype; grad1/grad2 have x's shape and dtype grad_dtype
    (default: x's dtype, preserving the original module semantics).
    """
    orig_shape = x.shape
    dtype = x.dtype
    g_dtype = dtype if grad_dtype is None else jnp.dtype(grad_dtype)
    n = x.size
    itemsize = jnp.dtype(dtype).itemsize
    sub = _sublane_multiple(dtype)

    lanes = _choose_lanes(n, sub)
    min_block = sub * lanes

    # Pad only up to the minimum (sublane, lane) tile (at most sub*lanes - 1
    # elements); in the common case (n divisible) this is a no-op.
    # TODO(synk): the ragged path costs extra full-array HBM passes (input pad
    # + per-output [:n] slice); callers that can consume the padded (rows, lanes)
    # layout directly should do so.
    n_pad = -(-n // min_block) * min_block
    x_flat = x.reshape(-1)
    if n_pad != n:
        x_flat = jnp.pad(x_flat, (0, n_pad - n))
    rows = n_pad // lanes
    x2d = x_flat.reshape(rows, lanes)

    num_out = 3 if save_grad else 1
    out_dtypes = (dtype,) + ((g_dtype, g_dtype) if save_grad else ())
    out_itemsize = sum(jnp.dtype(d).itemsize for d in out_dtypes)
    per_elem_io = itemsize + out_itemsize  # HBM bytes moved per element

    # ---- generation-aware block sizing --------------------------------------
    vmem_cap = _vmem_capacity_bytes()
    if block_bytes is None:
        block_bytes = 2 << 20  # 2 MiB: on the HBM roofline on every generation
    # Keep the double-buffered resident set (2 bufs x (input + outputs)) under
    # ~1/3 of physical VMEM, whatever the caller asked for.
    max_block = max(min_block * itemsize,
                    (vmem_cap * itemsize) // (6 * per_elem_io))
    block_bytes = min(int(block_bytes), int(max_block))

    target_rows = max(sub, (block_bytes // (lanes * itemsize)) // sub * sub)
    tile_rows = min(target_rows, rows)
    # Megacore (v7x): if the array would be a single grid block, split it so the
    # "parallel" axis has >= 2 blocks and both TensorCores get work.
    if tile_rows >= rows and rows >= 2 * sub:
        half = -(-((rows + 1) // 2) // sub) * sub  # ceil(rows/2) rounded up to sub
        tile_rows = max(sub, min(half, rows - sub))
    grid = (pl.cdiv(rows, tile_rows),)  # ragged final block is clipped by Pallas

    spec = pl.BlockSpec((tile_rows, lanes), lambda i: (i, 0))

    # Explicit scoped-VMEM limit: resident I/O buffers + f32 compute temporaries
    # + fixed headroom, capped just under physical VMEM.
    tile_elems = tile_rows * lanes
    resident_io = 2 * tile_elems * per_elem_io
    vmem_limit = resident_io + 6 * tile_elems * 4 + (4 << 20)
    vmem_limit = int(min(max(vmem_limit, 8 << 20), vmem_cap - (2 << 20)))

    kernel = functools.partial(
        _softplus_kernel,
        beta=float(beta),
        threshold=float(threshold),
        save_grad=save_grad,
    )

    cost = pl.CostEstimate(
        flops=6 * n,
        transcendentals=(4 if save_grad else 2) * n,
        bytes_accessed=n * per_elem_io,
    )

    results = pl.pallas_call(
        kernel,
        out_shape=tuple(
            jax.ShapeDtypeStruct((rows, lanes), d) for d in out_dtypes
        ),
        grid_spec=pltpu.PrefetchScalarGridSpec(
            num_scalar_prefetch=0,
            grid=grid,
            in_specs=[spec],
            out_specs=tuple(spec for _ in range(num_out)),
        ),
        compiler_params=pltpu.CompilerParams(
            dimension_semantics=("parallel",),
            vmem_limit_bytes=vmem_limit,
        ),
        cost_estimate=cost,
    )(x2d)

    def unflatten(a):
        if n_pad == n:
            return a.reshape(orig_shape)
        return a.reshape(-1)[:n].reshape(orig_shape)

    if save_grad:
        out2d, g1_2d, g2_2d = results
        return unflatten(out2d), unflatten(g1_2d), unflatten(g2_2d)
    (out2d,) = results
    return unflatten(out2d)


def _reference(x, beta=1.0, threshold=20.0):
    bx = beta * x
    sp = jnp.log1p(jnp.exp(jnp.minimum(bx, threshold))) / beta
    out = jnp.where(bx > threshold, x, sp)
    sig = jax.nn.sigmoid(x)
    return out, sig, sig * (1.0 - sig)


if __name__ == "__main__":
    key = jax.random.PRNGKey(0)
    # Small NCHW-like input, consistent with how this module is used in a conv net.
    x = jax.random.normal(key, (2, 4, 16, 16), dtype=jnp.float32) * 8.0

    out, grad1, grad2 = softplus_pallas(x, beta=1.0, threshold=20.0)
    jax.block_until_ready((out, grad1, grad2))

    ref_out, ref_g1, ref_g2 = _reference(x)
    assert jnp.allclose(out, ref_out, atol=1e-5, rtol=1e-5)
    assert jnp.allclose(grad1, ref_g1, atol=1e-6, rtol=1e-5)
    assert jnp.allclose(grad2, ref_g2, atol=1e-6, rtol=1e-5)

    # Ragged (non-tile-multiple) size exercises the minimal-pad path.
    x2 = jax.random.normal(jax.random.PRNGKey(1), (3, 5, 7), dtype=jnp.float32) * 8.0
    out2, g1b, g2b = softplus_pallas(x2)
    jax.block_until_ready((out2, g1b, g2b))
    r_out2, r_g1b, r_g2b = _reference(x2)
    assert jnp.allclose(out2, r_out2, atol=1e-5, rtol=1e-5)
    assert jnp.allclose(g1b, r_g1b, atol=1e-6, rtol=1e-5)
    assert jnp.allclose(g2b, r_g2b, atol=1e-6, rtol=1e-5)

    # save_grad=False path (output only; drops 2/3 of write traffic).
    out3 = softplus_pallas(x, save_grad=False)
    jax.block_until_ready(out3)
    assert jnp.allclose(out3, ref_out, atol=1e-5, rtol=1e-5)

    # Narrow-grad path (grad streams in bf16; values bounded in (0,1)/(0,0.25]).
    out4, g1c, g2c = softplus_pallas(x, grad_dtype=jnp.bfloat16)
    jax.block_until_ready((out4, g1c, g2c))
    assert jnp.allclose(out4, ref_out, atol=1e-5, rtol=1e-5)
    assert jnp.allclose(g1c.astype(jnp.float32), ref_g1, atol=1e-2, rtol=1e-2)
    assert jnp.allclose(g2c.astype(jnp.float32), ref_g2, atol=1e-2, rtol=1e-2)

    print("KERNEL_OK")
</pallas_src>

<mosaic_0001>
module attributes {stable_mosaic.version = 11 : i64} {
  func.func @_softplus_kernel(%arg0: i32, %arg1: memref<8x256xf32, #tpu.memory_space<vmem>>, %arg2: memref<8x256xf32, #tpu.memory_space<vmem>>, %arg3: memref<8x256xf32, #tpu.memory_space<vmem>>, %arg4: memref<8x256xf32, #tpu.memory_space<vmem>>) attributes {dimension_semantics = [#tpu.dimension_semantics<parallel>], iteration_bounds = array<i64: 1>, scalar_prefetch = 0 : i64, scratch_operands = 0 : i64, tpu.core_type = #tpu.core_type<tc>, window_params = [{transform_indices = @transform_0, window_bounds = array<i64: 8, 256>}, {transform_indices = @transform_1, window_bounds = array<i64: 8, 256>}, {transform_indices = @transform_2, window_bounds = array<i64: 8, 256>}, {transform_indices = @transform_3, window_bounds = array<i64: 8, 256>}]} {
    %c0 = arith.constant 0 : index
    %c0_0 = arith.constant 0 : index
    %0 = vector.load %arg1[%c0, %c0_0] : memref<8x256xf32, #tpu.memory_space<vmem>>, vector<8x256xf32>
    %cst = arith.constant 1.000000e+00 : f32
    %1 = vector.broadcast %cst : f32 to vector<8x256xf32>
    %2 = arith.mulf %1, %0 : vector<8x256xf32>
    %cst_1 = arith.constant 2.000000e+01 : f32
    %3 = vector.broadcast %cst_1 : f32 to vector<8x256xf32>
    %4 = arith.minimumf %2, %3 : vector<8x256xf32>
    %5 = math.exp %4 : vector<8x256xf32>
    %6 = math.log1p %5 : vector<8x256xf32>
    %cst_2 = arith.constant 1.000000e+00 : f32
    %7 = vector.broadcast %cst_2 : f32 to vector<8x256xf32>
    %8 = arith.mulf %6, %7 : vector<8x256xf32>
    %cst_3 = arith.constant 2.000000e+01 : f32
    %9 = vector.broadcast %cst_3 : f32 to vector<8x256xf32>
    %10 = arith.cmpf ogt, %2, %9 : vector<8x256xf32>
    %11 = arith.select %10, %0, %8 : vector<8x256xi1>, vector<8x256xf32>
    %c0_4 = arith.constant 0 : index
    %c0_5 = arith.constant 0 : index
    %12 = vector.load %arg2[%c0_4, %c0_5] : memref<8x256xf32, #tpu.memory_space<vmem>>, vector<8x256xf32>
    tpu.vector_store %arg2[%c0_4, %c0_5], %11 {strides = array<i32>} : memref<8x256xf32, #tpu.memory_space<vmem>>, vector<8x256xf32>,
    %13 = arith.negf %0 : vector<8x256xf32>
    %14 = math.exp %13 : vector<8x256xf32>
    %cst_6 = arith.constant 1.000000e+00 : f32
    %15 = vector.broadcast %cst_6 : f32 to vector<8x256xf32>
    %16 = arith.addf %15, %14 : vector<8x256xf32>
    %17 = arith.divf %15, %16 : vector<8x256xf32>
    %c0_7 = arith.constant 0 : index
    %c0_8 = arith.constant 0 : index
    %18 = vector.load %arg3[%c0_7, %c0_8] : memref<8x256xf32, #tpu.memory_space<vmem>>, vector<8x256xf32>
    tpu.vector_store %arg3[%c0_7, %c0_8], %17 {strides = array<i32>} : memref<8x256xf32, #tpu.memory_space<vmem>>, vector<8x256xf32>,
    %cst_9 = arith.constant 1.000000e+00 : f32
    %19 = vector.broadcast %cst_9 : f32 to vector<8x256xf32>
    %20 = arith.subf %19, %17 : vector<8x256xf32>
    %21 = arith.mulf %17, %20 : vector<8x256xf32>
    %c0_10 = arith.constant 0 : index
    %c0_11 = arith.constant 0 : index
    %22 = vector.load %arg4[%c0_10, %c0_11] : memref<8x256xf32, #tpu.memory_space<vmem>>, vector<8x256xf32>
    tpu.vector_store %arg4[%c0_10, %c0_11], %21 {strides = array<i32>} : memref<8x256xf32, #tpu.memory_space<vmem>>, vector<8x256xf32>,
    return
  }
  func.func @transform_0(%arg0: i32) -> (i32, i32) {
    %c0_i32 = arith.constant 0 : i32
    %c0_i32_0 = arith.constant 0 : i32
    return %arg0, %c0_i32 : i32, i32
  }
  func.func @transform_1(%arg0: i32) -> (i32, i32) {
    %c0_i32 = arith.constant 0 : i32
    %c0_i32_0 = arith.constant 0 : i32
    return %arg0, %c0_i32 : i32, i32
  }
  func.func @transform_2(%arg0: i32) -> (i32, i32) {
    %c0_i32 = arith.constant 0 : i32
    %c0_i32_0 = arith.constant 0 : i32
    return %arg0, %c0_i32 : i32, i32
  }
  func.func @transform_3(%arg0: i32) -> (i32, i32) {
    %c0_i32 = arith.constant 0 : i32
    %c0_i32_0 = arith.constant 0 : i32
    return %arg0, %c0_i32 : i32, i32
  }
}

</mosaic_0001>

<bundles_post_ra>
// kernel: tpu_custom_call.1
= control target key start
LH: loop header
LB: loop body
LE: loop exit
PB: predicated region body
PF: predicated region fallthrough
CT: control target
= control target key end

     0   :  { %9 = vsyncpa [#allocation3], 0  ;;  %s289_s0 = inlined_call_operand.hbm [shape: f32[8,256], index: 0, kind: input, shape index: {}]   ;;  %s290_s1 = inlined_call_operand.hbm [shape: f32[8,256], index: 1, kind: output, shape index: {0}]   ;;  %s291_s2 = inlined_call_operand.hbm [shape: f32[8,256], index: 2, kind: output, shape index: {1}]   ;;  %s292_s3 = inlined_call_operand.hbm [shape: f32[8,256], index: 3, kind: output, shape index: {2}]  }
   0x1   :  { %10 = vsyncpa [#allocation4], 0 }
   0x2   :  { %11 = vsyncpa [#allocation7], 0  ;;  %s227_s12 = smov [#allocation2]  }
   0x3   :  { %s18_s13 = sshll.u32 %s227_s12, 4  ;;  %s19_s13 = int_to_ptr.vmem [resolvable:$true] %s18_s13 }
   0x4   :  { %s149_s14 = scalar_lea.vmem %s19_s13, 256  ;;  %p154_p1 = scmp.lt.s32.totalorder %s19_s13, %s19_s13 }
   0x5   :  { %p150_p0 = scmp.ne.s32.totalorder %s19_s13, %s149_s14  ;;  %p155_p2 = scmp.lt.s32.totalorder %s149_s14, %s149_s14 }
   0x7   :  { %p156_p3 = por %p155_p2, %p154_p1 }
   0x9   :  { %p157_p4 = pnand %p156_p3, %p150_p0 }
   0xb   :  { %160 = shalt.err (!%p157_p4)
}
   0xc   :  { %21 = dma.hbm_to_vmem [thread:$0]  %s289_s0, 256, %s19_s13, [#allocation3]  }
   0xd   :  { %221 = dma.done.wait [#allocation3], 256  }
   0xe   :  { %222 = vsyncadd [#allocation3], 4294967040  ;;  %v254_v0 = vld [vmem:[#allocation2] sm:$0xff]  ;;  %v256_v1 = vld [vmem:[#allocation2 + $0x8] sm:$0xff]  ;;  %s228_s0 = smov [#allocation6]   ;;  %s229_s18 = smov [#allocation8]  }
   0xf   :  { %v27_v2 = vmin.f32 %v254_v0, 20.0  ;;  %v119_v3 = vmul.f32 -1.442695, %v254_v0  ;;  %v28_v4 = vmin.f32 %v256_v1, 20.0  ;;  %v120_v5 = vmul.f32 -1.442695, %v256_v1 }
  0x10   :  { %s93_s17 = sshll.u32 %s228_s0, 4  ;;  %s103_s19 = sshll.u32 %s229_s18, 4  ;;  %vm51_vm1 = vcmp.gt.f32.partialorder %v254_v0, 20.0  ;;  %s94_s17 = int_to_ptr.vmem [resolvable:$true] %s93_s17  ;;  %s104_s19 = int_to_ptr.vmem [resolvable:$true] %s103_s19 }
  0x11   :  { %v29_v6 = vmul.f32 1.442695, %v27_v2  ;;  %125 = vpow2.f32 %v119_v3  ;;  %v31_v7 = vmul.f32 1.442695, %v28_v4  ;;  %s230_s20 = smov [#allocation5]   ;;  %s161_s22 = scalar_lea.vmem %s94_s17, 256 }
  0x12   :  { %127 = vpow2.f32 %v120_v5  ;;  %s83_s21 = sshll.u32 %s230_s20, 4  ;;  %p162_p5 = scmp.ne.s32.totalorder %s94_s17, %s161_s22  ;;  %s84_s21 = int_to_ptr.vmem [resolvable:$true] %s83_s21 }
  0x13   :  { %129 = vpow2.f32 %v29_v6  ;;  %p166_p6 = scmp.lt.s32.totalorder %s94_s17, %s94_s17  ;;  %p167_p7 = scmp.lt.s32.totalorder %s161_s22, %s161_s22 }
  0x14   :  { %131 = vpow2.f32 %v31_v7 }
  0x15   :  { %p168_p8 = por %p167_p7, %p166_p6 }
  0x17   :  { %p169_p9 = pnand %p168_p8, %p162_p5 }
  0x1e   :  { %v126_v8 = vpop.eup %125 }
  0x1f   :  { %v128_v9 = vpop.eup %127  ;;  %v63_v10 = vadd.f32 1.0, %v126_v8 }
  0x20   :  { %v130_v11 = vpop.eup %129  ;;  %v64_v12 = vadd.f32 1.0, %v128_v9 }
  0x21   :  { %v132_v13 = vpop.eup %131  ;;  %133 = vrcp.f32 %v63_v10  ;;  %v33_v14 = vadd.f32 1.0, %v130_v11  ;;  %v36_v16 = vmul.f32 -0.5, %v130_v11  ;;  %v39_v19 = vand.u32 2147483647, %v130_v11 }
  0x22   :  { %135 = vrcp.f32 %v64_v12  ;;  %v42_v15 = vadd.f32 1.0, %v132_v13  ;;  %v45_v17 = vmul.f32 -0.5, %v132_v13  ;;  %v48_v21 = vand.u32 2147483647, %v132_v13 }
  0x23   :  { %137 = vlog2.f32 %v33_v14  ;;  %v37_v18 = vadd.f32 1.0, %v36_v16  ;;  %vm262_vm0 = vcmp.lt.f32.partialorder %v39_v19, 0.0004427343 }
  0x24   :  { %139 = vlog2.f32 %v42_v15  ;;  %v46_v20 = vadd.f32 1.0, %v45_v17  ;;  %vm267_vm2 = vcmp.lt.f32.partialorder %v48_v21, 0.0004427343 }
  0x25   :  { %v38_v24 = vmul.f32 %v130_v11, %v37_v18 }
  0x26   :  { %v47_v28 = vmul.f32 %v132_v13, %v46_v20 }
  0x2e   :  { %v134_v22 = vpop.eup %133 }
  0x2f   :  { %v136_v23 = vpop.eup %135  ;;  %69 = vst [vmem:[#allocation6] sm:$0xff] %v134_v22  ;;  %v71_v25 = vsub.f32 1.0, %v134_v22 }
  0x30   :  { %v138_v26 = vpop.eup %137  ;;  %70 = vst [vmem:[#allocation6 + $0x8] sm:$0xff] %v136_v23  ;;  %v72_v29 = vsub.f32 1.0, %v136_v23 }
  0x31   :  { %v140_v30 = vpop.eup %139  ;;  %v35_v31 = vmul.f32 0.6931472, %v138_v26  ;;  %v73_v33 = vmul.f32 %v134_v22, %v71_v25 }
  0x32   :  { %172 = shalt.err (!%p169_p9)
}
  0x33   :  { %96 = dma.vmem_to_hbm [thread:$0]  %s94_s17, 256, %s291_s2, [#allocation7]   ;;  %v44_v34 = vmul.f32 0.6931472, %v140_v30  ;;  %vm52_vm3 = vcmp.gt.f32.partialorder %v256_v1, 20.0  ;;  %v74_v35 = vmul.f32 %v136_v23, %v72_v29  ;;  %v41_v36 = vsel %vm262_vm0, %v38_v24, %v35_v31  ;;  %75 = vst [vmem:[#allocation8] sm:$0xff] %v73_v33 }
  0x34   :  { %v53_v37 = vsel %vm51_vm1, %v254_v0, %v41_v36  ;;  %s181_s2 = scalar_lea.vmem %s104_s19, 256  ;;  %p186_p11 = scmp.lt.s32.totalorder %s104_s19, %s104_s19 }
  0x35   :  { %v50_v38 = vsel %vm267_vm2, %v47_v28, %v44_v34  ;;  %76 = vst [vmem:[#allocation8 + $0x8] sm:$0xff] %v74_v35  ;;  %55 = vst [vmem:[#allocation5] sm:$0xff] %v53_v37  ;;  %p182_p10 = scmp.ne.s32.totalorder %s104_s19, %s181_s2  ;;  %p187_p12 = scmp.lt.s32.totalorder %s181_s2, %s181_s2 }
  0x36   :  { %v54_v39 = vsel %vm52_vm3, %v256_v1, %v50_v38 }
  0x37   :  { %p188_p13 = por %p187_p12, %p186_p11 }
  0x39   :  { %p189_p0 = pnand %p188_p13, %p182_p10 }
  0x3b   :  { %192 = shalt.err (!%p189_p0)
}
  0x3c   :  { %106 = dma.vmem_to_hbm [thread:$0]  %s104_s19, 256, %s292_s3, [#allocation7]   ;;  %56 = vst [vmem:[#allocation5 + $0x8] sm:$0xff] %v54_v39 }
  0x3d   :  { %s201_s27 = scalar_lea.vmem %s84_s21, 256  ;;  %p206_p2 = scmp.lt.s32.totalorder %s84_s21, %s84_s21 }
  0x3e   :  { %p202_p1 = scmp.ne.s32.totalorder %s84_s21, %s201_s27  ;;  %p207_p3 = scmp.lt.s32.totalorder %s201_s27, %s201_s27 }
  0x40   :  { %p208_p4 = por %p207_p3, %p206_p2 }
  0x42   :  { %p209_p5 = pnand %p208_p4, %p202_p1 }
  0x44   :  { %212 = shalt.err (!%p209_p5)
}
  0x45   :  { %86 = dma.vmem_to_hbm [thread:$0]  %s84_s21, 256, %s290_s1, [#allocation4]  }
  0x46   :  { %223 = dma.done.wait [#allocation4], 256  }
  0x47   :  { %224 = vsyncadd [#allocation4], 4294967040 }
  0x48   :  { %225 = dma.done.wait [#allocation7], 512  }
  0x49   :  { %226 = vsyncadd [#allocation7], 4294966784 }
  0x4a   :  { %116 = vsyncpa [#allocation3], 1 }
  0x4b   :  { %117 = vsyncpa [#allocation4], 1 }
  0x4c   :  { %118 = vsyncpa [#allocation7], 1 }

</bundles_post_ra>
